<compile_context>
chip_gen: v7x
topology: tpu7x:2x2x1
jax: 0.10.0
libtpu: 0.0.40
codegen_flags: <defaults>
</compile_context>

<pallas_src>
import math

import jax
import jax.numpy as jnp
from jax.experimental import pallas as pl
from jax.experimental.pallas import tpu as pltpu

_LANES = 128
_MAX_PACK_WIDTH = 512          # cap on packed-row width (k * last)


def _cdiv(a, b):
    return -(-a // b)


def _round_up(x, m):
    return _cdiv(x, m) * m


def _sublane_multiple(dtype):
    itemsize = jnp.dtype(dtype).itemsize
    return max(8, 32 // max(1, itemsize))   # f32 -> 8, bf16 -> 16, int8 -> 32


def _chip_budget():
    """(target_block_bytes, vmem_limit_bytes, min_grid) per TPU generation."""
    vmem_phys = None
    try:
        info = pltpu.get_tpu_info()
        vmem_phys = int(getattr(info, "vmem_capacity_bytes", 0)) or None
    except Exception:
        vmem_phys = None
    if vmem_phys is None:
        # Unknown chip: conservative budget that is safe even on v7x (64 MiB VMEM).
        return 4 * 1024 * 1024, 48 * 1024 * 1024, 2
    if vmem_phys <= 96 * 1024 * 1024:
        # v7x-class: 64 MiB physical VMEM / TC, 2 TCs -> prefer >= 2 grid steps.
        return 4 * 1024 * 1024, 48 * 1024 * 1024, 2
    # v5e / v6e: 128 MiB physical VMEM, single TensorCore -> biggest tiles win.
    return 6 * 1024 * 1024, 64 * 1024 * 1024, 1


_TARGET_BLOCK_BYTES, _VMEM_LIMIT, _MIN_GRID = _chip_budget()


def _pick_k(last, rows):
    """Lane-packing factor: pack k original rows side-by-side so the packed width
    (k*last) fills the 128-lane vregs as densely as possible; prefer a k that
    divides rows (no wrapper-side pad) when its utilisation is close to best."""
    if last >= _LANES:
        return 1
    kmax = max(1, _MAX_PACK_WIDTH // last)

    def util(k):
        w = k * last
        return w / _round_up(w, _LANES)

    best_k = 1
    for k in range(2, kmax + 1):
        if util(k) > util(best_k) + 1e-9:
            best_k = k
    if rows % best_k != 0:
        alt_k = None
        for k in range(1, kmax + 1):
            if rows % k == 0 and (alt_k is None or util(k) > util(alt_k)):
                alt_k = k
        if alt_k is not None and util(alt_k) >= 0.9 * util(best_k):
            return alt_k
    return best_k


def _pick_row_tile(rows_p, row_bytes, mult):
    """Row tile ~_TARGET_BLOCK_BYTES per input block, multiple of the sublane
    multiple, split into >= _MIN_GRID steps only when the chip has 2 TCs."""
    cap = max(mult, (_TARGET_BLOCK_BYTES // max(1, row_bytes)) // mult * mult)
    want = _round_up(_cdiv(rows_p, max(1, _MIN_GRID)), mult)
    tr = max(mult, min(cap, want))
    if tr >= rows_p:
        return rows_p           # single full-extent block (always a legal shape)
    return tr


# ----------------------------- kernels --------------------------------------


def _l1_rowsum_seg_kernel(o_ref, g_ref, seg_ref, loss_ref):
    # |o - g| then per-original-row sum via the resident 0/1 segment matrix (MXU).
    diff = jnp.abs(o_ref[...] - g_ref[...])
    loss_ref[...] = jnp.dot(
        diff, seg_ref[...], preferred_element_type=jnp.float32
    ).astype(loss_ref.dtype)


def _l1_rowsum_kernel(o_ref, g_ref, loss_ref):
    diff = jnp.abs(o_ref[...] - g_ref[...]).astype(jnp.float32)
    loss_ref[...] = jnp.sum(diff, axis=-1, keepdims=True).astype(loss_ref.dtype)


def _make_ktiled_rowsum_kernel(last_total, tl):
    masked = (last_total % tl) != 0

    def kernel(o_ref, g_ref, loss_ref, acc_ref):
        kj = pl.program_id(1)

        @pl.when(kj == 0)
        def _():
            acc_ref[...] = jnp.zeros_like(acc_ref)

        diff = jnp.abs(o_ref[...] - g_ref[...]).astype(jnp.float32)
        if masked:
            col = kj * tl + jax.lax.broadcasted_iota(jnp.int32, diff.shape, 1)
            diff = jnp.where(col < last_total, diff, 0.0)
        acc_ref[...] += jnp.sum(diff, axis=-1, keepdims=True)

        @pl.when(kj == pl.num_programs(1) - 1)
        def _():
            loss_ref[...] = acc_ref[...].astype(loss_ref.dtype)

    return kernel


def _l1_abs_kernel(o_ref, g_ref, loss_ref):
    loss_ref[...] = jnp.abs(o_ref[...] - g_ref[...])


# ----------------------------- wrappers --------------------------------------


def _l1_reduce_last_ktiled(out2, gt2):
    """Very wide last dim: tile the reduction axis (second, 'arbitrary' grid axis)."""
    rows, last = out2.shape
    dtype = out2.dtype
    itemsize = jnp.dtype(dtype).itemsize
    mult = _sublane_multiple(dtype)

    tl = max(_LANES, (_TARGET_BLOCK_BYTES // (mult * itemsize)) // _LANES * _LANES)
    tl = min(tl, _round_up(last, _LANES))
    tr = max(mult, (_TARGET_BLOCK_BYTES // max(1, tl * itemsize)) // mult * mult)
    if tr >= rows:
        tr = rows
    grid = (_cdiv(rows, tr), _cdiv(last, tl))

    res = pl.pallas_call(
        _make_ktiled_rowsum_kernel(last, tl),
        out_shape=jax.ShapeDtypeStruct((rows, 1), dtype),
        grid=grid,
        in_specs=[pl.BlockSpec((tr, tl), lambda i, j: (i, j)),
                  pl.BlockSpec((tr, tl), lambda i, j: (i, j))],
        out_specs=pl.BlockSpec((tr, 1), lambda i, j: (i, 0)),
        scratch_shapes=[pltpu.VMEM((tr, 1), jnp.float32)],
        compiler_params=pltpu.CompilerParams(
            dimension_semantics=("parallel", "arbitrary"),
            vmem_limit_bytes=_VMEM_LIMIT),
    )(out2, gt2)
    return res.reshape(-1)


def _l1_reduce_last(out2, gt2):
    """out2, gt2: (rows, last). Returns per-row L1 sums, shape (rows,)."""
    rows, last = out2.shape
    dtype = out2.dtype
    itemsize = jnp.dtype(dtype).itemsize
    mult = _sublane_multiple(dtype)

    if _round_up(last, _LANES) * itemsize * mult > _TARGET_BLOCK_BYTES:
        return _l1_reduce_last_ktiled(out2, gt2)

    k = _pick_k(last, rows)
    rem = rows % k
    rows_kernel = rows
    if rem:
        # Only pad when rows is not a multiple of the packing factor (rare; k is
        # chosen to divide rows when possible).  |0-0| = 0 rows are sliced off.
        pad = k - rem
        out2 = jnp.pad(out2, ((0, pad), (0, 0)))
        gt2 = jnp.pad(gt2, ((0, pad), (0, 0)))
        rows_kernel = rows + pad

    width = k * last
    rows_p = rows_kernel // k
    outp = out2.reshape(rows_p, width)       # contiguous reshape: free
    gtp = gt2.reshape(rows_p, width)

    tr = _pick_row_tile(rows_p, width * itemsize, mult)
    grid = _cdiv(rows_p, tr)                 # last block may be partial: reads in the
                                             # dead region only feed masked-out rows.

    in_specs = [pl.BlockSpec((tr, width), lambda i: (i, 0)),
                pl.BlockSpec((tr, width), lambda i: (i, 0))]
    operands = [outp, gtp]
    if k > 1:
        # Segment matrix hoisted out of the kernel body; the index_map returns the
        # same block every step, so it is DMA'd once and stays resident in VMEM.
        w_idx = jnp.arange(width, dtype=jnp.int32)[:, None]
        c_idx = jnp.arange(k, dtype=jnp.int32)[None, :]
        seg = (w_idx // last == c_idx).astype(dtype)
        in_specs.append(pl.BlockSpec((width, k), lambda i: (0, 0)))
        operands.append(seg)
        kernel = _l1_rowsum_seg_kernel
    else:
        kernel = _l1_rowsum_kernel

    res = pl.pallas_call(
        kernel,
        out_shape=jax.ShapeDtypeStruct((rows_p, k), dtype),
        grid=(grid,),
        in_specs=in_specs,
        out_specs=pl.BlockSpec((tr, k), lambda i: (i, 0)),
        compiler_params=pltpu.CompilerParams(
            dimension_semantics=("parallel",),
            vmem_limit_bytes=_VMEM_LIMIT),
    )(*operands)

    flat = res.reshape(-1)
    return flat[:rows] if rows_kernel != rows else flat


def _l1_elementwise(out, gt):
    """ndim <= 1: pure elementwise |out - gt| (no reduction), no pad / no slice."""
    shape = out.shape
    dtype = out.dtype
    itemsize = jnp.dtype(dtype).itemsize
    n = out.size

    o2 = out.reshape(1, n)
    g2 = gt.reshape(1, n)

    # A (1, tn) VMEM tile is padded to 8 sublanes, so budget with an 8x factor.
    cap = max(_LANES, (_TARGET_BLOCK_BYTES // (8 * itemsize)) // _LANES * _LANES)
    if n <= cap:
        tn, grid = n, 1
    else:
        tn, grid = cap, _cdiv(n, cap)

    res = pl.pallas_call(
        _l1_abs_kernel,
        out_shape=jax.ShapeDtypeStruct((1, n), dtype),
        grid=(grid,),
        in_specs=[pl.BlockSpec((1, tn), lambda i: (0, i)),
                  pl.BlockSpec((1, tn), lambda i: (0, i))],
        out_specs=pl.BlockSpec((1, tn), lambda i: (0, i)),
        compiler_params=pltpu.CompilerParams(
            dimension_semantics=("parallel",),
            vmem_limit_bytes=_VMEM_LIMIT),
    )(o2, g2)
    return res.reshape(shape)


@jax.jit
def l1_loss(out, gt):
    """Pallas equivalent of L1.forward(out, gt):
    reduction='none' L1, then summed over the last axis when ndim > 1."""
    assert out.shape == gt.shape, "out and gt must have identical shapes"

    if out.ndim == 0:
        return jnp.abs(out - gt)            # degenerate scalar: no kernel needed
    if out.ndim == 1:
        if out.size == 0:
            return jnp.abs(out - gt)
        return _l1_elementwise(out, gt)

    *lead, last = out.shape
    rows = math.prod(lead)
    if rows == 0 or last == 0:
        return jnp.zeros(tuple(lead), dtype=out.dtype)

    out2 = out.reshape(rows, last)
    gt2 = gt.reshape(rows, last)
    flat = _l1_reduce_last(out2, gt2)
    return flat.reshape(tuple(lead))


if __name__ == "__main__":
    key = jax.random.PRNGKey(0)
    k1, k2, k3, k4, k5, k6, k7, k8 = jax.random.split(key, 8)

    # Main case: small NCHW image-style loss (last axis W=16 -> lane packing, k=8,
    # rows=128 divisible by k -> no pad at all).
    B, C, H, W = 2, 4, 16, 16
    out = jax.random.normal(k1, (B, C, H, W), dtype=jnp.float32)
    gt = jax.random.normal(k2, (B, C, H, W), dtype=jnp.float32)
    loss = l1_loss(out, gt)
    jax.block_until_ready(loss)
    ref = jnp.sum(jnp.abs(out - gt), axis=-1)
    assert loss.shape == (B, C, H), loss.shape
    assert jnp.allclose(loss, ref, atol=1e-5, rtol=1e-5), "4-D mismatch vs reference"

    # Wide-last / awkward-rows case (k==1 sum path, full-extent single block, no pad).
    out2d = jax.random.normal(k3, (37, 256), dtype=jnp.float32)
    gt2d = jax.random.normal(k4, (37, 256), dtype=jnp.float32)
    loss2d = l1_loss(out2d, gt2d)
    jax.block_until_ready(loss2d)
    ref2d = jnp.sum(jnp.abs(out2d - gt2d), axis=-1)
    assert loss2d.shape == (37,), loss2d.shape
    assert jnp.allclose(loss2d, ref2d, atol=1e-5, rtol=1e-5), "2-D mismatch vs reference"

    # Rows not divisible by the ideal packing factor (exercises divisor-aware k choice).
    out3d = jax.random.normal(k5, (3, 5, 16), dtype=jnp.float32)
    gt3d = jax.random.normal(k6, (3, 5, 16), dtype=jnp.float32)
    loss3d = l1_loss(out3d, gt3d)
    jax.block_until_ready(loss3d)
    ref3d = jnp.sum(jnp.abs(out3d - gt3d), axis=-1)
    assert loss3d.shape == (3, 5), loss3d.shape
    assert jnp.allclose(loss3d, ref3d, atol=1e-5, rtol=1e-5), "3-D mismatch vs reference"

    # 1-D case: no reduction, pure elementwise |out - gt|.
    out1d = jax.random.normal(k7, (37,), dtype=jnp.float32)
    gt1d = jax.random.normal(k8, (37,), dtype=jnp.float32)
    loss1d = l1_loss(out1d, gt1d)
    jax.block_until_ready(loss1d)
    ref1d = jnp.abs(out1d - gt1d)
    assert loss1d.shape == (37,), loss1d.shape
    assert jnp.allclose(loss1d, ref1d, atol=1e-6, rtol=1e-6), "1-D mismatch vs reference"

    print("KERNEL_OK")
</pallas_src>

<mosaic_0001>
module attributes {stable_mosaic.version = 11 : i64} {
  func.func @_l1_rowsum_seg_kernel(%arg0: i32, %arg1: memref<8x128xf32, #tpu.memory_space<vmem>>, %arg2: memref<8x128xf32, #tpu.memory_space<vmem>>, %arg3: memref<128x8xf32, #tpu.memory_space<vmem>>, %arg4: memref<8x8xf32, #tpu.memory_space<vmem>>) attributes {dimension_semantics = [#tpu.dimension_semantics<parallel>], iteration_bounds = array<i64: 2>, scalar_prefetch = 0 : i64, scratch_operands = 0 : i64, tpu.core_type = #tpu.core_type<tc>, window_params = [{transform_indices = @transform_0, window_bounds = array<i64: 8, 128>}, {transform_indices = @transform_1, window_bounds = array<i64: 8, 128>}, {pipeline_mode = #tpu.pipeline_mode<synchronous>, transform_indices = @transform_2, window_bounds = array<i64: 128, 8>}, {transform_indices = @transform_3, window_bounds = array<i64: 8, 8>}]} {
    %c0 = arith.constant 0 : index
    %c0_0 = arith.constant 0 : index
    %0 = vector.load %arg1[%c0, %c0_0] : memref<8x128xf32, #tpu.memory_space<vmem>>, vector<8x128xf32>
    %c0_1 = arith.constant 0 : index
    %c0_2 = arith.constant 0 : index
    %1 = vector.load %arg2[%c0_1, %c0_2] : memref<8x128xf32, #tpu.memory_space<vmem>>, vector<8x128xf32>
    %2 = arith.subf %0, %1 : vector<8x128xf32>
    %3 = math.absf %2 : vector<8x128xf32>
    %c0_3 = arith.constant 0 : index
    %c0_4 = arith.constant 0 : index
    %4 = vector.load %arg3[%c0_3, %c0_4] : memref<128x8xf32, #tpu.memory_space<vmem>>, vector<128x8xf32>
    %cst = arith.constant dense<0.000000e+00> : vector<8x8xf32>
    %5 = tpu.matmul %3, %4, %cst {dimension_numbers = #tpu.dot_dimension_numbers<[1], [0], [0], [1], [0, 0, 1, 1], [], []>} : vector<8x128xf32>, vector<128x8xf32>, vector<8x8xf32> -> vector<8x8xf32>
    %c0_5 = arith.constant 0 : index
    %c0_6 = arith.constant 0 : index
    %6 = vector.load %arg4[%c0_5, %c0_6] : memref<8x8xf32, #tpu.memory_space<vmem>>, vector<8x8xf32>
    tpu.vector_store %arg4[%c0_5, %c0_6], %5 {strides = array<i32>} : memref<8x8xf32, #tpu.memory_space<vmem>>, vector<8x8xf32>,
    return
  }
  func.func @transform_0(%arg0: i32) -> (i32, i32) {
    %c0_i32 = arith.constant 0 : i32
    %c0_i32_0 = arith.constant 0 : i32
    return %arg0, %c0_i32 : i32, i32
  }
  func.func @transform_1(%arg0: i32) -> (i32, i32) {
    %c0_i32 = arith.constant 0 : i32
    %c0_i32_0 = arith.constant 0 : i32
    return %arg0, %c0_i32 : i32, i32
  }
  func.func @transform_2(%arg0: i32) -> (i32, i32) {
    %c0_i32 = arith.constant 0 : i32
    %c0_i32_0 = arith.constant 0 : i32
    %c0_i32_1 = arith.constant 0 : i32
    return %c0_i32, %c0_i32_0 : i32, i32
  }
  func.func @transform_3(%arg0: i32) -> (i32, i32) {
    %c0_i32 = arith.constant 0 : i32
    %c0_i32_0 = arith.constant 0 : i32
    return %arg0, %c0_i32 : i32, i32
  }
}

</mosaic_0001>

<bundles_post_ra>
// kernel: l1_loss.1
= control target key start
LH: loop header
LB: loop body
LE: loop exit
PB: predicated region body
PF: predicated region fallthrough
CT: control target
= control target key end

     0   :  { %s468_s12 = smov 0   ;;  %s540_s0 = inlined_call_operand.vmem [shape: f32[16,128], index: 0, kind: input, shape index: {}]   ;;  %s541_s1 = inlined_call_operand.vmem [shape: f32[16,128], index: 1, kind: input, shape index: {}]   ;;  %s542_s2 = inlined_call_operand.vmem [shape: f32[128,8], index: 2, kind: input, shape index: {}]   ;;  %s543_s3 = inlined_call_operand.vmem [shape: f32[16,8], index: 3, kind: output, shape index: {}]  }
   0x1 LB: > { %s340_s13 = sadd.s32 4294967295, %s443_s12   ;;  %p344_p0 = scmp.ge.s32.totalorder %s443_s12, 1  ;;  %s443_s12 = sphi %s468_s12, %s13_s12  }
   0x2   : > { %p145_p1 = scmp.lt.s32.totalorder %s443_s12, 3 }
   0x4   : > { %p146_p2 = pnand %p344_p0, %p145_p1 }
   0x5   : > { %v187_v0 = vld [vmem:[%s542_s2] sm:$0xff] (!%p146_p2)  ;;  %v188_v1 = vld [vmem:[%s542_s2 + $0x8] sm:$0xff] (!%p146_p2)  ;;  %v189_v2 = vld [vmem:[%s542_s2 + $0x10] sm:$0xff] (!%p146_p2)  ;;  %v445_v3 = vmov (!%p146_p2), 0.0|0.0   ;;  %vm446_vm0 = vmmov (!%p146_p2), 0   ;;  %v447_v6 = vmov (!%p146_p2), 0.0  }
   0x6   : > { %149 = sbr.rel (%p146_p2) target bundleno = 252 (0xfc), region = 32  ;;  %402 = vmatprep.subr.bf16.mxu0 (!%p146_p2), %v445_v3  ;;  %v403_v4 = vpack.c.bf16 (!%p146_p2), %v188_v1, %v187_v0  ;;  %v190_v5 = vld [vmem:[%s542_s2 + $0x18] sm:$0xff] (!%p146_p2)  ;;  %399 = vmatprep.mubr.msk.f32.mxu0 (!%p146_p2), %vm446_vm0, %v447_v6  ;;  %v191_v8 = vld [vmem:[%s542_s2 + $0x20] sm:$0xff] (!%p146_p2)  ;;  %v192_v9 = vld [vmem:[%s542_s2 + $0x28] sm:$0xff] (!%p146_p2)  ;;  %p171_p3 = scmp.lt.s32.totalorder (!%p146_p2), %s340_s13, 1  ;;  %vm273_vm1 = vcmask (!%p146_p2), 64512  }
   0x7   : > { %v406_v7 = vpack.c.bf16 (!%p146_p2), %v190_v5, %v189_v2  ;;  %v409_v10 = vpack.c.bf16 (!%p146_p2), %v192_v9, %v191_v8  ;;  %v193_v11 = vld [vmem:[%s542_s2 + $0x30] sm:$0xff] (!%p146_p2)  ;;  %v194_v12 = vld [vmem:[%s542_s2 + $0x38] sm:$0xff] (!%p146_p2)  ;;  %v195_v14 = vld [vmem:[%s542_s2 + $0x40] sm:$0xff] (!%p146_p2) }
   0x8   : > { %404 = vmatpush3.bf16.msra.mxu0 (!%p146_p2), %v403_v4  ;;  %v412_v13 = vpack.c.bf16 (!%p146_p2), %v194_v12, %v193_v11  ;;  %v196_v15 = vld [vmem:[%s542_s2 + $0x48] sm:$0xff] (!%p146_p2)  ;;  %v197_v17 = vld [vmem:[%s542_s2 + $0x50] sm:$0xff] (!%p146_p2)  ;;  %v198_v18 = vld [vmem:[%s542_s2 + $0x58] sm:$0xff] (!%p146_p2) }
   0x9   : > { %405 = vmatprep.subr.bf16.mxu0 (!%p146_p2), %v445_v3  ;;  %v415_v16 = vpack.c.bf16 (!%p146_p2), %v196_v15, %v195_v14  ;;  %v418_v19 = vpack.c.bf16 (!%p146_p2), %v198_v18, %v197_v17  ;;  %v199_v20 = vld [vmem:[%s542_s2 + $0x60] sm:$0xff] (!%p146_p2)  ;;  %v200_v21 = vld [vmem:[%s542_s2 + $0x68] sm:$0xff] (!%p146_p2)  ;;  %v201_v25 = vld [vmem:[%s542_s2 + $0x70] sm:$0xff] (!%p146_p2) }
   0xa   : > { %v421_v22 = vpack.c.bf16 (!%p146_p2), %v200_v21, %v199_v20  ;;  %v202_v26 = vld [vmem:[%s542_s2 + $0x78] sm:$0xff] (!%p146_p2) }
   0xb   : > { %v424_v28 = vpack.c.bf16 (!%p146_p2), %v202_v26, %v201_v25 }
   0xc   : > { %407 = vmatpush3.bf16.msra.mxu0 (!%p146_p2), %v406_v7 }
   0xd   : > { %408 = vmatprep.subr.bf16.mxu0 %v445_v3  ;;  %s545_s13 = smov (!%p171_p3, %s340_s13), 1 }
   0xe   : > { %s345_s11 = sshll.u32 %s545_s13, 3 }
   0xf   : > { %s174_s20 = scalar_lea.vmem %s540_s0, %s345_s11  ;;  %s178_s23 = scalar_lea.vmem %s541_s1, %s345_s11 }
  0x10   : > { %410 = vmatpush3.bf16.msra.mxu0 %v409_v10  ;;  %v183_v23 = vld [vmem:[%s174_s20] sm:$0xff]  ;;  %s182_s29 = scalar_lea.vmem %s543_s3, %s345_s11 }
  0x11   : > { %411 = vmatprep.subr.bf16.mxu0 %v445_v3  ;;  %v184_v24 = vld [vmem:[%s178_s23] sm:$0xff] }
  0x12   : > { %v185_v27 = vsub.f32 %v183_v23, %v184_v24 }
  0x14   : > { %413 = vmatpush3.bf16.msra.mxu0 %v412_v13  ;;  %v186_v29 = vand.u32 2147483647, %v185_v27 }
  0x15   : > { %414 = vmatprep.subr.bf16.mxu0 %v445_v3 }
  0x18   : > { %416 = vmatpush3.bf16.msra.mxu0 %v415_v16 }
  0x19   : > { %417 = vmatprep.subr.bf16.mxu0 %v445_v3 }
  0x1c   : > { %419 = vmatpush3.bf16.msra.mxu0 %v418_v19 }
  0x1d   : > { %420 = vmatprep.subr.bf16.mxu0 %v445_v3 }
  0x20   : > { %422 = vmatpush3.bf16.msra.mxu0 %v421_v22 }
  0x21   : > { %423 = vmatprep.subr.bf16.mxu0 %v445_v3 }
  0x24   : > { %425 = vmatpush3.bf16.msra.mxu0 %v424_v28 }
  0x27   : > { %400 = vmatmul.mubr.f32.vlgmr.msra.gmra.mrb[0].mxu0 %v186_v29 }
  0xfa   : > { %v269_v30 = vpop.f32.mrb[0].mxu0 }
  0xfb   : > { %274 = vst.msk [vmem:[%s182_s29] sm:$0xff] %vm273_vm1, %v269_v30  ;;  %v401_v31 = vpop.f32.mrb[1].mxu0 }
  0xfc PF: > { %s13_s12 = sadd.s32 1, %s443_s12  }
  0xfd   : > { %p10_p4 = scmp.ge.s32.totalorder %s13_s12, 4  }
  0xff   :  { %12 = sbr.rel (!%p10_p4) target bundleno = 1 (0x1), region = 65 }

</bundles_post_ra>
